<compile_context>
chip_gen: v7x
topology: tpu7x:2x2x1
jax: 0.10.0
libtpu: 0.0.40
codegen_flags: <defaults>
</compile_context>

<pallas_src>
import jax
import jax.numpy as jnp
from jax.experimental import pallas as pl
from jax.experimental.pallas import tpu as pltpu


def _hbm_copy_kernel(x_hbm_ref, o_hbm_ref):
    """Single bulk HBM->HBM DMA copying the whole input buffer to the output."""

    def body(sem):
        cp = pltpu.make_async_copy(x_hbm_ref, o_hbm_ref, sem)
        cp.start()
        cp.wait()

    pl.run_scoped(body, pltpu.SemaphoreType.DMA)


def default_layer_copy_pallas(x):
    """Explicit materialized pass-through copy of `x` (placeholder path only).

    The identity layer itself does NOT call this; it exists only for callers
    that need a distinct output buffer. Implemented as one HBM->HBM DMA —
    no grid, no VMEM staging, works for any shape/dtype.
    """
    nbytes = x.size * jnp.dtype(x.dtype).itemsize
    return pl.pallas_call(
        _hbm_copy_kernel,
        out_shape=jax.ShapeDtypeStruct(x.shape, x.dtype),
        in_specs=[pl.BlockSpec(memory_space=pl.ANY)],
        out_specs=pl.BlockSpec(memory_space=pl.ANY),
        cost_estimate=pl.CostEstimate(
            flops=0, transcendentals=0, bytes_accessed=2 * nbytes
        ),
    )(x)


class DefaultLayer:
    """JAX equivalent of the PyTorch DefaultLayer (identity).

    The forward pass launches no kernel and moves no data: it returns its input.
    """

    def __init__(self, in1_channels, in2_channels, bilinear=False):
        # No parameters — the PyTorch __init__ creates none.
        self.in1_channels = in1_channels
        self.in2_channels = in2_channels
        self.bilinear = bilinear

    def __call__(self, x):
        return x


if __name__ == "__main__":
    key = jax.random.PRNGKey(0)
    # Small NCHW input consistent with a UNet connection layer.
    x = jax.random.normal(key, (2, 4, 16, 16), dtype=jnp.float32)

    # Recommended path: true no-op identity (the module's semantics).
    layer = DefaultLayer(in1_channels=4, in2_channels=4, bilinear=False)
    y = layer(x)
    y = jax.block_until_ready(y)
    assert y.shape == x.shape and y.dtype == x.dtype
    assert (y is x) or bool(jnp.all(y == x))

    # Exercise the single-DMA pass-through copy once (placeholder path).
    z = jax.block_until_ready(default_layer_copy_pallas(x))
    assert z.shape == x.shape and z.dtype == x.dtype
    assert bool(jnp.all(z == x))

    # Also confirm it works under jit (no aliasing/donation hazards).
    z2 = jax.block_until_ready(jax.jit(default_layer_copy_pallas)(x))
    assert bool(jnp.all(z2 == x))

    print("KERNEL_OK")
</pallas_src>

<mosaic_0001>
module attributes {stable_mosaic.version = 11 : i64} {
  func.func @_hbm_copy_kernel(%arg0: memref<2x4x16x16xf32, #tpu.memory_space<any>>, %arg1: memref<2x4x16x16xf32, #tpu.memory_space<any>>) attributes {dimension_semantics = [], scalar_prefetch = 0 : i64, scratch_operands = 0 : i64, tpu.core_type = #tpu.core_type<tc>} {
    "tpu.region"() ({
      %0 = tpu.sem_alloc : memref<!tpu.dma_semaphore, #tpu.memory_space<semaphore_mem>>
      tpu.enqueue_dma source(%arg0 : memref<2x4x16x16xf32, #tpu.memory_space<any>>) target(%arg1 : memref<2x4x16x16xf32, #tpu.memory_space<any>>) target_semaphore(%0 : memref<!tpu.dma_semaphore, #tpu.memory_space<semaphore_mem>>)
      tpu.wait_dma2 semaphore(%0 : memref<!tpu.dma_semaphore, #tpu.memory_space<semaphore_mem>>) src(%arg0 : memref<2x4x16x16xf32, #tpu.memory_space<any>>) dst(%arg1 : memref<2x4x16x16xf32, #tpu.memory_space<any>>)
      tpu.yield
    }) : () -> ()
    return
  }
}

</mosaic_0001>

<bundles_post_ra>
// kernel: tpu_custom_call.1
= control target key start
LH: loop header
LB: loop body
LE: loop exit
PB: predicated region body
PF: predicated region fallthrough
CT: control target
= control target key end

     0   :  { %s29_s6 = smov [#allocation2]   ;;  %s30_s7 = smov [#allocation3]   ;;  %s48_s0 = inlined_call_operand.hbm [shape: f32[2,4,16,16], index: 0, kind: input, shape index: {}]   ;;  %s49_s1 = inlined_call_operand.hbm [shape: f32[2,4,16,16], index: 1, kind: output, shape index: {}]  }
   0x1   :  { %s31_s8 = smov 0  }
   0x2   :  { %18 = dma.general %s48_s0, 2048, %s49_s1, %s29_s6, %s30_s7, [#allocation4], %s31_s8, 0  }
   0x3   :  { %27 = dma.done.wait [#allocation2], 2048 }
   0x4   :  { %28 = vsyncadd [#allocation2], 4294965248 }

</bundles_post_ra>
